<compile_context>
chip_gen: v7x
topology: tpu7x:2x2x1
jax: 0.10.0
libtpu: 0.0.40
codegen_flags: <defaults>
</compile_context>

<pallas_src>
import functools

import jax
import jax.numpy as jnp
from jax import lax
from jax.experimental import pallas as pl
from jax.experimental.pallas import tpu as pltpu

_LN_EPS = 1e-5
_SQRT_2_RECIP = 0.7071067811865476


def _layernorm_f32(x, gamma, beta):
    """LayerNorm over the last dim, eps inside the sqrt (matches nn.LayerNorm)."""
    mu = jnp.mean(x, axis=-1, keepdims=True)
    xc = x - mu
    var = jnp.mean(xc * xc, axis=-1, keepdims=True)
    return xc * lax.rsqrt(var + _LN_EPS) * gamma + beta


def _erf_poly(z):
    """Abramowitz & Stegun 7.1.26 erf approximation (|err| < 1.5e-7)."""
    a1, a2, a3, a4, a5 = (0.254829592, -0.284496736, 1.421413741,
                          -1.453152027, 1.061405429)
    p = 0.3275911
    az = jnp.abs(z)
    # Divide moved to the EUP (approx reciprocal), keeps the VALU free.
    t = pl.reciprocal(1.0 + p * az, approx=True)
    poly = ((((a5 * t + a4) * t + a3) * t + a2) * t + a1) * t
    y = 1.0 - poly * jnp.exp(-az * az)
    return jnp.where(z < 0.0, -y, y)


def _gelu_exact(x):
    return 0.5 * x * (1.0 + _erf_poly(x * _SQRT_2_RECIP))


# --------------------------------------------------------------------------
# Kernel 1: LayerNorm1 + QKV projection  (row-tiled over M = B*N)
# Emits q / k / v as three (M, C) arrays (attention-friendly layout, no glue).
# --------------------------------------------------------------------------
def ln_qkv_kernel(x_ref, g_ref, b_ref, wq_ref, wk_ref, wv_ref,
                  bq_ref, bk_ref, bv_ref, q_ref, k_ref, v_ref, *, mxu_dtype):
    x = x_ref[...].astype(jnp.float32)
    xn = _layernorm_f32(x, g_ref[...], b_ref[...]).astype(mxu_dtype)
    q = jnp.dot(xn, wq_ref[...], preferred_element_type=jnp.float32) + bq_ref[...]
    k = jnp.dot(xn, wk_ref[...], preferred_element_type=jnp.float32) + bk_ref[...]
    v = jnp.dot(xn, wv_ref[...], preferred_element_type=jnp.float32) + bv_ref[...]
    q_ref[...] = q.astype(q_ref.dtype)
    k_ref[...] = k.astype(k_ref.dtype)
    v_ref[...] = v.astype(v_ref.dtype)


# --------------------------------------------------------------------------
# Kernel 2: softmax attention, ALL heads of one batch per grid step.
# Output written as a lane-dense (N, H*Dh) == (N, C) slab per batch.
# --------------------------------------------------------------------------
def attn_kernel(q_ref, k_ref, v_ref, o_ref, *, num_heads, scale, mxu_dtype):
    head_dim = q_ref.shape[-1] // num_heads
    q_all = q_ref[...]
    k_all = k_ref[...]
    v_all = v_ref[...]
    outs = []
    for h in range(num_heads):                      # static unrolled head loop
        sl = slice(h * head_dim, (h + 1) * head_dim)
        qh = q_all[:, sl].astype(mxu_dtype)
        kh = k_all[:, sl].astype(mxu_dtype)
        vh = v_all[:, sl].astype(mxu_dtype)
        # q @ k^T without an explicit transpose (contract last dims).
        s = lax.dot_general(qh, kh, (((1,), (1,)), ((), ())),
                            preferred_element_type=jnp.float32) * scale
        s = s - jnp.max(s, axis=-1, keepdims=True)
        p = jnp.exp(s)
        p = p * pl.reciprocal(jnp.sum(p, axis=-1, keepdims=True), approx=True)
        outs.append(jnp.dot(p.astype(mxu_dtype), vh,
                            preferred_element_type=jnp.float32))
    o_ref[...] = jnp.concatenate(outs, axis=-1).astype(o_ref.dtype)


# --------------------------------------------------------------------------
# Kernel 3: attn-proj + residual + LayerNorm2 + MLP (fc1, GELU, fc2) + residual
# MLP hidden dim processed in chunks (no full (TM, Hd) intermediate).
# --------------------------------------------------------------------------
def proj_mlp_kernel(y_ref, x_ref, wp_ref, bp_ref, g2_ref, be2_ref,
                    w1_ref, b1_ref, w2_ref, b2_ref, o_ref, *,
                    hidden_chunk, mxu_dtype):
    y = y_ref[...].astype(mxu_dtype)              # attention output tile (TM, C)
    x = x_ref[...].astype(jnp.float32)            # residual input tile   (TM, C)
    x1 = x + jnp.dot(y, wp_ref[...], preferred_element_type=jnp.float32) + bp_ref[...]
    xn = _layernorm_f32(x1, g2_ref[...], be2_ref[...]).astype(mxu_dtype)

    hidden = w1_ref.shape[1]
    acc = x1 + b2_ref[...]                        # fc2 bias added once
    for j in range(0, hidden, hidden_chunk):      # static chunked hidden loop
        jn = min(j + hidden_chunk, hidden)
        h = (jnp.dot(xn, w1_ref[:, j:jn], preferred_element_type=jnp.float32)
             + b1_ref[:, j:jn])
        h = _gelu_exact(h).astype(mxu_dtype)
        acc = acc + jnp.dot(h, w2_ref[j:jn, :], preferred_element_type=jnp.float32)
    o_ref[...] = acc.astype(o_ref.dtype)


# --------------------------------------------------------------------------
# Wrapper
# --------------------------------------------------------------------------
def _round_up(a, b):
    return (a + b - 1) // b * b


def vit_block(x, params, num_heads, *, tm=512, mxu_dtype=None,
              hidden_chunk=512, single_buffer_weights=False):
    """Forward pass of the ViT Block. x: (B, N, C).

    tm:      row-tile size over M = B*N. 512-1024 for v5e/v6e (128 MiB VMEM),
             <=256 for v7x (64 MiB VMEM).
    mxu_dtype: dtype fed to the MXU (and used for q/k/v/attn intermediates).
             Pass jnp.bfloat16 for deployment; LN/softmax/GELU math and all
             accumulation stay f32 regardless.
    single_buffer_weights: set True on v7x / large models to single-buffer the
             resident weights (pl.Buffered(1)).
    """
    B, N, C = x.shape
    assert C % num_heads == 0
    assert N % 8 == 0, "sequence length must be a multiple of 8 (sublane tile)"
    head_dim = C // num_heads
    hidden = params["w1"].shape[1]
    dtype = x.dtype
    mxu_dtype = jnp.dtype(dtype if mxu_dtype is None else mxu_dtype)
    inter_dtype = mxu_dtype                       # q/k/v + attn-out intermediates
    f32 = jnp.float32

    M = B * N
    TM = min(tm, _round_up(M, 8))
    grid_m = pl.cdiv(M, TM)

    x2 = x.reshape(M, C)                          # row-major, free reshape

    # Parameters: weights in the MXU-feed dtype, biases / LN params in f32.
    g1 = params["g1"].reshape(1, C).astype(f32)
    be1 = params["be1"].reshape(1, C).astype(f32)
    wq = params["w_qkv"][:, :C].astype(mxu_dtype)
    wk = params["w_qkv"][:, C:2 * C].astype(mxu_dtype)
    wv = params["w_qkv"][:, 2 * C:].astype(mxu_dtype)
    bq = params["b_qkv"][:C].reshape(1, C).astype(f32)
    bk = params["b_qkv"][C:2 * C].reshape(1, C).astype(f32)
    bv = params["b_qkv"][2 * C:].reshape(1, C).astype(f32)
    wp = params["w_proj"].astype(mxu_dtype)
    bp = params["b_proj"].reshape(1, C).astype(f32)
    g2 = params["g2"].reshape(1, C).astype(f32)
    be2 = params["be2"].reshape(1, C).astype(f32)
    w1 = params["w1"].astype(mxu_dtype)
    b1 = params["b1"].reshape(1, hidden).astype(f32)
    w2 = params["w2"].astype(mxu_dtype)
    b2 = params["b2"].reshape(1, C).astype(f32)

    in_b = jnp.dtype(dtype).itemsize
    w_b = mxu_dtype.itemsize
    it_b = jnp.dtype(inter_dtype).itemsize

    def vmem_limit(nbytes):
        # tiles + resident weights, x4 for double-buffering + headroom; clamped.
        return int(min(max(4 * int(nbytes), 32 * 1024 * 1024), 100 * 1024 * 1024))

    def const_spec(shape):
        # Resident (grid-invariant) operand; optionally single-buffered (v7x).
        if single_buffer_weights:
            return pl.BlockSpec(shape, lambda i: (0,) * len(shape),
                                pipeline_mode=pl.Buffered(1))
        return pl.BlockSpec(shape, lambda i: (0,) * len(shape))

    row_spec = pl.BlockSpec((TM, C), lambda i: (i, 0))

    # ---- 1) LayerNorm1 + QKV projection (row-tiled over M) ----------------
    k1_bytes = TM * C * in_b + 3 * TM * C * it_b + 3 * C * C * w_b + 8 * C * 4
    q, k, v = pl.pallas_call(
        functools.partial(ln_qkv_kernel, mxu_dtype=mxu_dtype),
        out_shape=tuple(jax.ShapeDtypeStruct((M, C), inter_dtype) for _ in range(3)),
        grid_spec=pltpu.PrefetchScalarGridSpec(
            num_scalar_prefetch=0,
            grid=(grid_m,),
            in_specs=[
                row_spec,                                   # x tile (TM, C)
                const_spec((1, C)), const_spec((1, C)),     # gamma1, beta1
                const_spec((C, C)), const_spec((C, C)), const_spec((C, C)),  # Wq,Wk,Wv
                const_spec((1, C)), const_spec((1, C)), const_spec((1, C)),  # bq,bk,bv
            ],
            out_specs=(row_spec, row_spec, row_spec),
        ),
        compiler_params=pltpu.CompilerParams(
            dimension_semantics=("parallel",),
            vmem_limit_bytes=vmem_limit(k1_bytes)),
        cost_estimate=pl.CostEstimate(
            flops=2 * M * C * 3 * C,
            transcendentals=M,
            bytes_accessed=M * C * (in_b + 3 * it_b) + 3 * C * C * w_b),
    )(x2, g1, be1, wq, wk, wv, bq, bk, bv)

    # ---- 2) attention: all heads of one batch per grid step ---------------
    k2_bytes = 4 * N * C * it_b + num_heads * N * N * 4
    attn_out = pl.pallas_call(
        functools.partial(attn_kernel, num_heads=num_heads,
                          scale=float(head_dim) ** -0.5, mxu_dtype=mxu_dtype),
        out_shape=jax.ShapeDtypeStruct((M, C), inter_dtype),
        grid_spec=pltpu.PrefetchScalarGridSpec(
            num_scalar_prefetch=0,
            grid=(B,),
            in_specs=[
                pl.BlockSpec((N, C), lambda b: (b, 0)),     # q rows of batch b
                pl.BlockSpec((N, C), lambda b: (b, 0)),     # k rows of batch b
                pl.BlockSpec((N, C), lambda b: (b, 0)),     # v rows of batch b
            ],
            out_specs=pl.BlockSpec((N, C), lambda b: (b, 0)),
        ),
        compiler_params=pltpu.CompilerParams(
            dimension_semantics=("parallel",),
            vmem_limit_bytes=vmem_limit(k2_bytes)),
        cost_estimate=pl.CostEstimate(
            flops=4 * B * num_heads * N * N * head_dim,
            transcendentals=B * num_heads * N * N,
            bytes_accessed=4 * M * C * it_b),
    )(q, k, v)

    # ---- 3) proj + residual + LayerNorm2 + MLP + residual ------------------
    hc = max(min(hidden_chunk, hidden), 1)
    k3_bytes = (2 * TM * C * it_b + TM * C * in_b + TM * hc * 4
                + (C * C + 2 * C * hidden) * w_b + 8 * C * 4 + hidden * 4)
    out = pl.pallas_call(
        functools.partial(proj_mlp_kernel, hidden_chunk=hc, mxu_dtype=mxu_dtype),
        out_shape=jax.ShapeDtypeStruct((M, C), dtype),
        grid_spec=pltpu.PrefetchScalarGridSpec(
            num_scalar_prefetch=0,
            grid=(grid_m,),
            in_specs=[
                row_spec,                                    # attn out tile
                row_spec,                                    # residual x tile
                const_spec((C, C)), const_spec((1, C)),      # W_proj, b_proj
                const_spec((1, C)), const_spec((1, C)),      # gamma2, beta2
                const_spec((C, hidden)), const_spec((1, hidden)),  # W1, b1
                const_spec((hidden, C)), const_spec((1, C)),       # W2, b2
            ],
            out_specs=row_spec,
        ),
        compiler_params=pltpu.CompilerParams(
            dimension_semantics=("parallel",),
            vmem_limit_bytes=vmem_limit(k3_bytes)),
        cost_estimate=pl.CostEstimate(
            flops=2 * M * (C * C + 2 * C * hidden),
            transcendentals=M * hidden + M,
            bytes_accessed=M * C * (2 * it_b + in_b)
                           + (C * C + 2 * C * hidden) * w_b),
    )(attn_out, x2, wp, bp, g2, be2, w1, b1, w2, b2)

    return out.reshape(B, N, C)


# --------------------------------------------------------------------------
# Pure-JAX reference (mirrors the PyTorch Block forward, eval mode)
# --------------------------------------------------------------------------
def block_reference(x, params, num_heads):
    B, N, C = x.shape
    Dh = C // num_heads

    def ln(z, g, b):
        mu = z.mean(-1, keepdims=True)
        zc = z - mu
        var = (zc * zc).mean(-1, keepdims=True)
        return zc * lax.rsqrt(var + _LN_EPS) * g + b

    h = ln(x, params["g1"], params["be1"])
    qkv = h @ params["w_qkv"] + params["b_qkv"]
    qkv = qkv.reshape(B, N, 3, num_heads, Dh).transpose(2, 0, 3, 1, 4)
    q, k, v = qkv[0], qkv[1], qkv[2]
    attn = (q @ jnp.swapaxes(k, -1, -2)) * (float(Dh) ** -0.5)
    attn = jax.nn.softmax(attn, axis=-1)
    y = (attn @ v).transpose(0, 2, 1, 3).reshape(B, N, C)
    y = y @ params["w_proj"] + params["b_proj"]
    x = x + y
    h = ln(x, params["g2"], params["be2"])
    h = h @ params["w1"] + params["b1"]
    h = 0.5 * h * (1.0 + lax.erf(h * _SQRT_2_RECIP))   # exact GELU
    h = h @ params["w2"] + params["b2"]
    return x + h


if __name__ == "__main__":
    # Small shapes consistent with the module: batch=2, seq=8, dim=32,
    # num_heads=4 (head_dim=8), mlp_ratio=4 -> hidden=128.
    B, N, C = 2, 8, 32
    num_heads = 4
    hidden = int(C * 4.0)

    key = jax.random.PRNGKey(0)
    ks = jax.random.split(key, 12)
    x = jax.random.normal(ks[0], (B, N, C), dtype=jnp.float32)
    params = {
        "g1": 1.0 + 0.02 * jax.random.normal(ks[1], (C,), dtype=jnp.float32),
        "be1": 0.02 * jax.random.normal(ks[2], (C,), dtype=jnp.float32),
        "w_qkv": 0.02 * jax.random.normal(ks[3], (C, 3 * C), dtype=jnp.float32),
        "b_qkv": jnp.zeros((3 * C,), dtype=jnp.float32),   # qkv_bias=False (default)
        "w_proj": 0.02 * jax.random.normal(ks[4], (C, C), dtype=jnp.float32),
        "b_proj": 0.02 * jax.random.normal(ks[5], (C,), dtype=jnp.float32),
        "g2": 1.0 + 0.02 * jax.random.normal(ks[6], (C,), dtype=jnp.float32),
        "be2": 0.02 * jax.random.normal(ks[7], (C,), dtype=jnp.float32),
        "w1": 0.02 * jax.random.normal(ks[8], (C, hidden), dtype=jnp.float32),
        "b1": 0.02 * jax.random.normal(ks[9], (hidden,), dtype=jnp.float32),
        "w2": 0.02 * jax.random.normal(ks[10], (hidden, C), dtype=jnp.float32),
        "b2": 0.02 * jax.random.normal(ks[11], (C,), dtype=jnp.float32),
    }

    ref = block_reference(x, params, num_heads)

    # f32 MXU feed: tight check.
    out = jax.block_until_ready(vit_block(x, params, num_heads))
    assert out.shape == (B, N, C)
    assert jnp.allclose(out, ref, atol=1e-3, rtol=1e-3), float(
        jnp.max(jnp.abs(out - ref)))

    # bf16 MXU feed (deployment mode): exercise the path with a looser check.
    out_bf16 = jax.block_until_ready(
        vit_block(x, params, num_heads, mxu_dtype=jnp.bfloat16))
    assert jnp.allclose(out_bf16, ref, atol=5e-2, rtol=5e-2), float(
        jnp.max(jnp.abs(out_bf16 - ref)))

    print("KERNEL_OK")
</pallas_src>

<mosaic_0001>
module attributes {stable_mosaic.version = 11 : i64} {
  func.func @ln_qkv_kernel(%arg0: i32, %arg1: memref<16x32xf32, #tpu.memory_space<vmem>>, %arg2: memref<1x32xf32, #tpu.memory_space<vmem>>, %arg3: memref<1x32xf32, #tpu.memory_space<vmem>>, %arg4: memref<32x32xf32, #tpu.memory_space<vmem>>, %arg5: memref<32x32xf32, #tpu.memory_space<vmem>>, %arg6: memref<32x32xf32, #tpu.memory_space<vmem>>, %arg7: memref<1x32xf32, #tpu.memory_space<vmem>>, %arg8: memref<1x32xf32, #tpu.memory_space<vmem>>, %arg9: memref<1x32xf32, #tpu.memory_space<vmem>>, %arg10: memref<16x32xf32, #tpu.memory_space<vmem>>, %arg11: memref<16x32xf32, #tpu.memory_space<vmem>>, %arg12: memref<16x32xf32, #tpu.memory_space<vmem>>) attributes {dimension_semantics = [#tpu.dimension_semantics<parallel>], iteration_bounds = array<i64: 1>, scalar_prefetch = 0 : i64, scratch_operands = 0 : i64, tpu.core_type = #tpu.core_type<tc>, window_params = [{transform_indices = @transform_0, window_bounds = array<i64: 16, 32>}, {pipeline_mode = #tpu.pipeline_mode<synchronous>, transform_indices = @transform_1, window_bounds = array<i64: 1, 32>}, {pipeline_mode = #tpu.pipeline_mode<synchronous>, transform_indices = @transform_2, window_bounds = array<i64: 1, 32>}, {pipeline_mode = #tpu.pipeline_mode<synchronous>, transform_indices = @transform_3, window_bounds = array<i64: 32, 32>}, {pipeline_mode = #tpu.pipeline_mode<synchronous>, transform_indices = @transform_4, window_bounds = array<i64: 32, 32>}, {pipeline_mode = #tpu.pipeline_mode<synchronous>, transform_indices = @transform_5, window_bounds = array<i64: 32, 32>}, {pipeline_mode = #tpu.pipeline_mode<synchronous>, transform_indices = @transform_6, window_bounds = array<i64: 1, 32>}, {pipeline_mode = #tpu.pipeline_mode<synchronous>, transform_indices = @transform_7, window_bounds = array<i64: 1, 32>}, {pipeline_mode = #tpu.pipeline_mode<synchronous>, transform_indices = @transform_8, window_bounds = array<i64: 1, 32>}, {transform_indices = @transform_9, window_bounds = array<i64: 16, 32>}, {transform_indices = @transform_10, window_bounds = array<i64: 16, 32>}, {transform_indices = @transform_11, window_bounds = array<i64: 16, 32>}]} {
    %c0 = arith.constant 0 : index
    %c0_0 = arith.constant 0 : index
    %0 = vector.load %arg1[%c0, %c0_0] : memref<16x32xf32, #tpu.memory_space<vmem>>, vector<16x32xf32>
    %c0_1 = arith.constant 0 : index
    %c0_2 = arith.constant 0 : index
    %1 = vector.load %arg2[%c0_1, %c0_2] : memref<1x32xf32, #tpu.memory_space<vmem>>, vector<1x32xf32>
    %c0_3 = arith.constant 0 : index
    %c0_4 = arith.constant 0 : index
    %2 = vector.load %arg3[%c0_3, %c0_4] : memref<1x32xf32, #tpu.memory_space<vmem>>, vector<1x32xf32>
    %cst = arith.constant dense<0.000000e+00> : vector<16xf32>
    %3 = vector.multi_reduction <add>, %0, %cst [1] : vector<16x32xf32> to vector<16xf32>
    %4 = vector.shape_cast %3 : vector<16xf32> to vector<16x1xf32>
    %cst_5 = arith.constant 3.200000e+01 : f32
    %5 = vector.broadcast %cst_5 : f32 to vector<16x1xf32>
    %6 = arith.divf %4, %5 : vector<16x1xf32>
    %7 = vector.broadcast %6 : vector<16x1xf32> to vector<16x32xf32>
    %8 = arith.subf %0, %7 : vector<16x32xf32>
    %9 = arith.mulf %8, %8 : vector<16x32xf32>
    %cst_6 = arith.constant dense<0.000000e+00> : vector<16xf32>
    %10 = vector.multi_reduction <add>, %9, %cst_6 [1] : vector<16x32xf32> to vector<16xf32>
    %11 = vector.shape_cast %10 : vector<16xf32> to vector<16x1xf32>
    %cst_7 = arith.constant 3.200000e+01 : f32
    %12 = vector.broadcast %cst_7 : f32 to vector<16x1xf32>
    %13 = arith.divf %11, %12 : vector<16x1xf32>
    %cst_8 = arith.constant 9.99999974E-6 : f32
    %14 = vector.broadcast %cst_8 : f32 to vector<16x1xf32>
    %15 = arith.addf %13, %14 : vector<16x1xf32>
    %16 = math.rsqrt %15 : vector<16x1xf32>
    %17 = vector.broadcast %16 : vector<16x1xf32> to vector<16x32xf32>
    %18 = arith.mulf %8, %17 : vector<16x32xf32>
    %19 = vector.broadcast %1 : vector<1x32xf32> to vector<16x32xf32>
    %20 = arith.mulf %18, %19 : vector<16x32xf32>
    %21 = vector.broadcast %2 : vector<1x32xf32> to vector<16x32xf32>
    %22 = arith.addf %20, %21 : vector<16x32xf32>
    %c0_9 = arith.constant 0 : index
    %c0_10 = arith.constant 0 : index
    %23 = vector.load %arg4[%c0_9, %c0_10] : memref<32x32xf32, #tpu.memory_space<vmem>>, vector<32x32xf32>
    %cst_11 = arith.constant dense<0.000000e+00> : vector<16x32xf32>
    %24 = tpu.matmul %22, %23, %cst_11 {dimension_numbers = #tpu.dot_dimension_numbers<[1], [0], [0], [1], [0, 0, 1, 1], [], []>} : vector<16x32xf32>, vector<32x32xf32>, vector<16x32xf32> -> vector<16x32xf32>
    %c0_12 = arith.constant 0 : index
    %c0_13 = arith.constant 0 : index
    %25 = vector.load %arg7[%c0_12, %c0_13] : memref<1x32xf32, #tpu.memory_space<vmem>>, vector<1x32xf32>
    %26 = vector.broadcast %25 : vector<1x32xf32> to vector<16x32xf32>
    %27 = arith.addf %24, %26 : vector<16x32xf32>
    %c0_14 = arith.constant 0 : index
    %c0_15 = arith.constant 0 : index
    %28 = vector.load %arg5[%c0_14, %c0_15] : memref<32x32xf32, #tpu.memory_space<vmem>>, vector<32x32xf32>
    %cst_16 = arith.constant dense<0.000000e+00> : vector<16x32xf32>
    %29 = tpu.matmul %22, %28, %cst_16 {dimension_numbers = #tpu.dot_dimension_numbers<[1], [0], [0], [1], [0, 0, 1, 1], [], []>} : vector<16x32xf32>, vector<32x32xf32>, vector<16x32xf32> -> vector<16x32xf32>
    %c0_17 = arith.constant 0 : index
    %c0_18 = arith.constant 0 : index
    %30 = vector.load %arg8[%c0_17, %c0_18] : memref<1x32xf32, #tpu.memory_space<vmem>>, vector<1x32xf32>
    %31 = vector.broadcast %30 : vector<1x32xf32> to vector<16x32xf32>
    %32 = arith.addf %29, %31 : vector<16x32xf32>
    %c0_19 = arith.constant 0 : index
    %c0_20 = arith.constant 0 : index
    %33 = vector.load %arg6[%c0_19, %c0_20] : memref<32x32xf32, #tpu.memory_space<vmem>>, vector<32x32xf32>
    %cst_21 = arith.constant dense<0.000000e+00> : vector<16x32xf32>
    %34 = tpu.matmul %22, %33, %cst_21 {dimension_numbers = #tpu.dot_dimension_numbers<[1], [0], [0], [1], [0, 0, 1, 1], [], []>} : vector<16x32xf32>, vector<32x32xf32>, vector<16x32xf32> -> vector<16x32xf32>
    %c0_22 = arith.constant 0 : index
    %c0_23 = arith.constant 0 : index
    %35 = vector.load %arg9[%c0_22, %c0_23] : memref<1x32xf32, #tpu.memory_space<vmem>>, vector<1x32xf32>
    %36 = vector.broadcast %35 : vector<1x32xf32> to vector<16x32xf32>
    %37 = arith.addf %34, %36 : vector<16x32xf32>
    %c0_24 = arith.constant 0 : index
    %c0_25 = arith.constant 0 : index
    %38 = vector.load %arg10[%c0_24, %c0_25] : memref<16x32xf32, #tpu.memory_space<vmem>>, vector<16x32xf32>
    tpu.vector_store %arg10[%c0_24, %c0_25], %27 {strides = array<i32>} : memref<16x32xf32, #tpu.memory_space<vmem>>, vector<16x32xf32>,
    %c0_26 = arith.constant 0 : index
    %c0_27 = arith.constant 0 : index
    %39 = vector.load %arg11[%c0_26, %c0_27] : memref<16x32xf32, #tpu.memory_space<vmem>>, vector<16x32xf32>
    tpu.vector_store %arg11[%c0_26, %c0_27], %32 {strides = array<i32>} : memref<16x32xf32, #tpu.memory_space<vmem>>, vector<16x32xf32>,
    %c0_28 = arith.constant 0 : index
    %c0_29 = arith.constant 0 : index
    %40 = vector.load %arg12[%c0_28, %c0_29] : memref<16x32xf32, #tpu.memory_space<vmem>>, vector<16x32xf32>
    tpu.vector_store %arg12[%c0_28, %c0_29], %37 {strides = array<i32>} : memref<16x32xf32, #tpu.memory_space<vmem>>, vector<16x32xf32>,
    return
  }
  func.func @transform_0(%arg0: i32) -> (i32, i32) {
    %c0_i32 = arith.constant 0 : i32
    %c0_i32_0 = arith.constant 0 : i32
    return %arg0, %c0_i32 : i32, i32
  }
  func.func @transform_1(%arg0: i32) -> (i32, i32) {
    %c0_i32 = arith.constant 0 : i32
    %c0_i32_0 = arith.constant 0 : i32
    %c0_i32_1 = arith.constant 0 : i32
    return %c0_i32, %c0_i32_0 : i32, i32
  }
  func.func @transform_2(%arg0: i32) -> (i32, i32) {
    %c0_i32 = arith.constant 0 : i32
    %c0_i32_0 = arith.constant 0 : i32
    %c0_i32_1 = arith.constant 0 : i32
    return %c0_i32, %c0_i32_0 : i32, i32
  }
  func.func @transform_3(%arg0: i32) -> (i32, i32) {
    %c0_i32 = arith.constant 0 : i32
    %c0_i32_0 = arith.constant 0 : i32
    %c0_i32_1 = arith.constant 0 : i32
    return %c0_i32, %c0_i32_0 : i32, i32
  }
  func.func @transform_4(%arg0: i32) -> (i32, i32) {
    %c0_i32 = arith.constant 0 : i32
    %c0_i32_0 = arith.constant 0 : i32
    %c0_i32_1 = arith.constant 0 : i32
    return %c0_i32, %c0_i32_0 : i32, i32
  }
  func.func @transform_5(%arg0: i32) -> (i32, i32) {
    %c0_i32 = arith.constant 0 : i32
    %c0_i32_0 = arith.constant 0 : i32
    %c0_i32_1 = arith.constant 0 : i32
    return %c0_i32, %c0_i32_0 : i32, i32
  }
  func.func @transform_6(%arg0: i32) -> (i32, i32) {
    %c0_i32 = arith.constant 0 : i32
    %c0_i32_0 = arith.constant 0 : i32
    %c0_i32_1 = arith.constant 0 : i32
    return %c0_i32, %c0_i32_0 : i32, i32
  }
  func.func @transform_7(%arg0: i32) -> (i32, i32) {
    %c0_i32 = arith.constant 0 : i32
    %c0_i32_0 = arith.constant 0 : i32
    %c0_i32_1 = arith.constant 0 : i32
    return %c0_i32, %c0_i32_0 : i32, i32
  }
  func.func @transform_8(%arg0: i32) -> (i32, i32) {
    %c0_i32 = arith.constant 0 : i32
    %c0_i32_0 = arith.constant 0 : i32
    %c0_i32_1 = arith.constant 0 : i32
    return %c0_i32, %c0_i32_0 : i32, i32
  }
  func.func @transform_9(%arg0: i32) -> (i32, i32) {
    %c0_i32 = arith.constant 0 : i32
    %c0_i32_0 = arith.constant 0 : i32
    return %arg0, %c0_i32 : i32, i32
  }
  func.func @transform_10(%arg0: i32) -> (i32, i32) {
    %c0_i32 = arith.constant 0 : i32
    %c0_i32_0 = arith.constant 0 : i32
    return %arg0, %c0_i32 : i32, i32
  }
  func.func @transform_11(%arg0: i32) -> (i32, i32) {
    %c0_i32 = arith.constant 0 : i32
    %c0_i32_0 = arith.constant 0 : i32
    return %arg0, %c0_i32 : i32, i32
  }
}

</mosaic_0001>

<bundles_post_ra>
// kernel: tpu_custom_call.1
= control target key start
LH: loop header
LB: loop body
LE: loop exit
PB: predicated region body
PF: predicated region fallthrough
CT: control target
= control target key end

     0   :  { %17 = vsyncpa [#allocation3], 0  ;;  %s949_s0 = inlined_call_operand.hbm [shape: f32[16,32], index: 0, kind: input, shape index: {}]   ;;  %s950_s1 = inlined_call_operand.vmem [shape: f32[1,32], index: 1, kind: input, shape index: {}]   ;;  %s951_s2 = inlined_call_operand.vmem [shape: f32[1,32], index: 2, kind: input, shape index: {}]   ;;  %s952_s3 = inlined_call_operand.hbm [shape: f32[32,32], index: 3, kind: input, shape index: {}]   ;;  %s953_s4 = inlined_call_operand.hbm [shape: f32[32,32], index: 4, kind: input, shape index: {}]   ;;  %s954_s5 = inlined_call_operand.hbm [shape: f32[32,32], index: 5, kind: input, shape index: {}]   ;;  %s955_s6 = inlined_call_operand.vmem [shape: f32[1,32], index: 6, kind: input, shape index: {}]   ;;  %s956_s7 = inlined_call_operand.vmem [shape: f32[1,32], index: 7, kind: input, shape index: {}]   ;;  %s957_s8 = inlined_call_operand.vmem [shape: f32[1,32], index: 8, kind: input, shape index: {}]   ;;  %s958_s9 = inlined_call_operand.hbm [shape: f32[16,32], index: 9, kind: output, shape index: {0}]   ;;  %s959_s10 = inlined_call_operand.hbm [shape: f32[16,32], index: 10, kind: output, shape index: {1}]   ;;  %s960_s11 = inlined_call_operand.hbm [shape: f32[16,32], index: 11, kind: output, shape index: {2}]  }
   0x1   :  { %18 = vsyncpa [#allocation6], 0 }
   0x2   :  { %19 = vsyncpa [#allocation9], 0 }
   0x3   :  { %20 = vsyncpa [#allocation4], 0 }
   0x4   :  { %21 = vsyncpa [#allocation12], 0  ;;  %s723_s17 = smov [#allocation5]   ;;  %s724_s19 = smov [#allocation2]  }
   0x5   :  { %s43_s18 = sshll.u32 %s723_s17, 4  ;;  %s27_s20 = sshll.u32 %s724_s19, 4  ;;  %s44_s18 = int_to_ptr.vmem [resolvable:$true] %s43_s18  ;;  %s792_s20 = int_to_ptr.vmem [resolvable:$true] %s27_s20 }
   0x6   :  { %s559_s23 = scalar_lea.hbm %s952_s3, 512 }
   0x7   :  { %p560_p0 = scmp.ne.s32.totalorder %s952_s3, %s559_s23  ;;  %p563_p1 = scmp.lt.u32.totalorder %s559_s23, %s952_s3 }
   0x9   :  { %p565_p2 = pnand %p563_p1, %p560_p0 }
   0xb   :  { %568 = shalt.err (!%p565_p2)
}
   0xc   :  { %s569_s28 = scalar_lea.vmem %s44_s18, 512  ;;  %p574_p4 = scmp.lt.s32.totalorder %s44_s18, %s44_s18 }
   0xd   :  { %p570_p3 = scmp.ne.s32.totalorder %s44_s18, %s569_s28  ;;  %p575_p5 = scmp.lt.s32.totalorder %s569_s28, %s569_s28 }
   0xf   :  { %p576_p6 = por %p575_p5, %p574_p4 }
  0x11   :  { %p577_p7 = pnand %p576_p6, %p570_p3 }
  0x13   :  { %580 = shalt.err (!%p577_p7)
}
  0x14   :  { %s725_s29 = smov 128   ;;  %s726_s30 = smov 8  }
  0x15   :  { %49 = dma.hbm_to_vmem [thread:$0]  %s952_s3, 512, %s44_s18, [#allocation6], %s725_s29, %s725_s29, %s726_s30  }
  0x16   :  { %s581_s16 = scalar_lea.hbm %s949_s0, 256 }
  0x17   :  { %p582_p8 = scmp.ne.s32.totalorder %s949_s0, %s581_s16  ;;  %p585_p9 = scmp.lt.u32.totalorder %s581_s16, %s949_s0 }
  0x19   :  { %p587_p10 = pnand %p585_p9, %p582_p8 }
  0x1b   :  { %590 = shalt.err (!%p587_p10)
}
  0x1c   :  { %s591_s23 = scalar_lea.vmem %s792_s20, 256  ;;  %p596_p12 = scmp.lt.s32.totalorder %s792_s20, %s792_s20 }
  0x1d   :  { %p592_p11 = scmp.ne.s32.totalorder %s792_s20, %s591_s23  ;;  %p597_p13 = scmp.lt.s32.totalorder %s591_s23, %s591_s23 }
  0x1f   :  { %p598_p0 = por %p597_p13, %p596_p12 }
  0x21   :  { %p599_p1 = pnand %p598_p0, %p592_p11 }
  0x23   :  { %602 = shalt.err (!%p599_p1)
}
  0x24   :  { %33 = dma.hbm_to_vmem [thread:$0]  %s949_s0, 256, %s792_s20, [#allocation3], %s725_s29, %s725_s29, %s726_s30  }
  0x25   :  { %s727_s24 = smov [#allocation7]   ;;  %s728_s26 = smov [#allocation8]  }
  0x26   :  { %s55_s25 = sshll.u32 %s727_s24, 4  ;;  %s67_s27 = sshll.u32 %s728_s26, 4  ;;  %s56_s25 = int_to_ptr.vmem [resolvable:$true] %s55_s25  ;;  %s829_s27 = int_to_ptr.vmem [resolvable:$true] %s67_s27 }
  0x27   :  { %s603_s13 = scalar_lea.hbm %s953_s4, 512 }
  0x28   :  { %p604_p2 = scmp.ne.s32.totalorder %s953_s4, %s603_s13  ;;  %p607_p3 = scmp.lt.u32.totalorder %s603_s13, %s953_s4 }
  0x2a   :  { %p609_p4 = pnand %p607_p3, %p604_p2 }
  0x2c   :  { %612 = shalt.err (!%p609_p4)
}
  0x2d   :  { %s613_s0 = scalar_lea.vmem %s56_s25, 512  ;;  %p618_p6 = scmp.lt.s32.totalorder %s56_s25, %s56_s25 }
  0x2e   :  { %p614_p5 = scmp.ne.s32.totalorder %s56_s25, %s613_s0  ;;  %p619_p7 = scmp.lt.s32.totalorder %s613_s0, %s613_s0 }
  0x30   :  { %p620_p8 = por %p619_p7, %p618_p6 }
  0x32   :  { %p621_p9 = pnand %p620_p8, %p614_p5 }
  0x34   :  { %624 = shalt.err (!%p621_p9)
}
  0x35   :  { %61 = dma.hbm_to_vmem [thread:$0]  %s953_s4, 512, %s56_s25, [#allocation6], %s725_s29, %s725_s29, %s726_s30  }
  0x36   :  { %s625_s23 = scalar_lea.hbm %s954_s5, 512 }
  0x37   :  { %p626_p10 = scmp.ne.s32.totalorder %s954_s5, %s625_s23  ;;  %p629_p11 = scmp.lt.u32.totalorder %s625_s23, %s954_s5 }
  0x39   :  { %p631_p12 = pnand %p629_p11, %p626_p10 }
  0x3b   :  { %634 = shalt.err (!%p631_p12)
}
  0x3c   :  { %s635_s28 = scalar_lea.vmem %s829_s27, 512  ;;  %p640_p0 = scmp.lt.s32.totalorder %s829_s27, %s829_s27 }
  0x3d   :  { %p636_p13 = scmp.ne.s32.totalorder %s829_s27, %s635_s28  ;;  %p641_p1 = scmp.lt.s32.totalorder %s635_s28, %s635_s28 }
  0x3f   :  { %p642_p2 = por %p641_p1, %p640_p0 }
  0x41   :  { %p643_p3 = pnand %p642_p2, %p636_p13 }
  0x43   :  { %646 = shalt.err (!%p643_p3)
}
  0x44   :  { %73 = dma.hbm_to_vmem [thread:$0]  %s954_s5, 512, %s829_s27, [#allocation9], %s725_s29, %s725_s29, %s726_s30  }
  0x45   :  { %713 = dma.done.wait [#allocation3], 256  }
  0x46   :  { %714 = vsyncadd [#allocation3], 4294967040 }
  0x47   :  { %715 = dma.done.wait [#allocation6], 1024  }
  0x48   :  { %716 = vsyncadd [#allocation6], 4294966272 }
  0x49   :  { %717 = dma.done.wait [#allocation9], 512  }
  0x4a   :  { %718 = vsyncadd [#allocation9], 4294966784  ;;  %vm96_vm0 = vcmask 261120   ;;  %v92_v0 = vld [vmem:[#allocation2] sm:$0xff]  ;;  %v93_v1 = vld [vmem:[#allocation2 + $0x8] sm:$0xff]  ;;  %s729_s16 = smov [#allocation11]  }
  0x4b   :  { %v97_v2 = vsel %vm96_vm0, %v92_v0, 0.0  ;;  %v100_v3 = vsel %vm96_vm0, %v93_v1, 0.0  ;;  %v140_v14 = vld [vmem:[#allocation5] sm:$0xff]  ;;  %v141_v15 = vld [vmem:[#allocation5 + $0x8] sm:$0xff]  ;;  %v142_v19 = vld [vmem:[#allocation5 + $0x10] sm:$0xff]  ;;  %s427_s17 = sshll.u32 %s729_s16, 4  ;;  %s428_s17 = int_to_ptr.vmem [resolvable:$true] %s427_s17 }
  0x4c   :  { %98 = vadd.xlane.f32.xlu0 %v97_v2  ;;  %v232_v16 = vld [vmem:[#allocation7] sm:$0xff]  ;;  %v522_v17 = vpack.c.bf16 %v141_v15, %v140_v14  ;;  %v233_v18 = vld [vmem:[#allocation7 + $0x8] sm:$0xff]  ;;  %v143_v20 = vld [vmem:[#allocation5 + $0x18] sm:$0xff]  ;;  %s730_s0 = smov [#allocation10]   ;;  %s647_s19 = scalar_lea.vmem %s428_s17, 256 }
  0x4d   :  { %v530_v21 = vpack.c.bf16 %v233_v18, %v232_v16  ;;  %v526_v22 = vpack.c.bf16 %v143_v20, %v142_v19  ;;  %v234_v23 = vld [vmem:[#allocation7 + $0x10] sm:$0xff]  ;;  %v235_v24 = vld [vmem:[#allocation7 + $0x18] sm:$0xff]  ;;  %v318_v26 = vld [vmem:[#allocation8] sm:$0xff]  ;;  %s415_s20 = sshll.u32 %s730_s0, 4  ;;  %p648_p4 = scmp.ne.s32.totalorder %s428_s17, %s647_s19  ;;  %s890_s20 = int_to_ptr.vmem [resolvable:$true] %s415_s20 }
  0x4e   :  { %523 = vmatprep.subr.bf16.mxu0 %v522_v17  ;;  %v534_v25 = vpack.c.bf16 %v235_v24, %v234_v23  ;;  %v319_v27 = vld [vmem:[#allocation8 + $0x8] sm:$0xff]  ;;  %v460_v36 = vld [vmem:[%s950_s1] ss:$0 sm:$0xff]  ;;  %v321_v44 = vld [vmem:[#allocation8 + $0x18] sm:$0xff]  ;;  %p652_p5 = scmp.lt.s32.totalorder %s428_s17, %s428_s17  ;;  %p653_p6 = scmp.lt.s32.totalorder %s647_s19, %s647_s19 }
  0x4f   :  { %525 = vmatpush3.bf16.msra.mxu0 %v522_v17  ;;  %531 = vmatprep.subr.bf16.mxu1 %v530_v21  ;;  %v538_v28 = vpack.c.bf16 %v319_v27, %v318_v26  ;;  %v461_v38 = vld [vmem:[%s951_s2] ss:$0 sm:$0xff] }
  0x50   :  { %101 = vadd.xlane.f32.xlu0 %v100_v3  ;;  %533 = vmatpush3.bf16.msra.mxu1 %v530_v21  ;;  %v320_v43 = vld [vmem:[#allocation8 + $0x10] sm:$0xff]  ;;  %p654_p7 = por %p653_p6, %p652_p5 }
  0x51   :  { %527 = vmatprep.subr.bf16.mxu0 %v526_v22  ;;  %535 = vmatprep.subr.bf16.mxu1 %v534_v25  ;;  %v542_v47 = vpack.c.bf16 %v321_v44, %v320_v43  ;;  %v462_v48 = vld [vmem:[%s955_s6] ss:$0 sm:$0xff] }
  0x52   :  { %v465_v49 = vld [vmem:[%s956_s7] ss:$0 sm:$0xff]  ;;  %p655_p8 = pnand %p654_p7, %p648_p4 }
  0x53   :  { %529 = vmatpush3.bf16.msra.mxu0 %v526_v22  ;;  %v468_v58 = vld [vmem:[%s957_s8] ss:$0 sm:$0xff] }
  0x54   :  { %537 = vmatpush3.bf16.msra.mxu1 %v534_v25  ;;  %539 = vmatprep.subr.bf16.mxu0 %v538_v28 }
  0xd9   :  { %v99_v4 = vpop.xlane.xlu0 %98 }
  0xda   :  { %v104_v5 = vmul.f32 0.03125, %v99_v4 }
  0xdc   :  { %v106_v6 = vsub.f32 %v92_v0, %v104_v5 }
  0xdd   :  { %v102_v7 = vpop.xlane.xlu0 %101 }
  0xde   :  { %v105_v8 = vmul.f32 0.03125, %v102_v7  ;;  %v108_v9 = vmul.f32 %v106_v6, %v106_v6 }
  0xe0   :  { %v107_v10 = vsub.f32 %v93_v1, %v105_v8  ;;  %v110_v11 = vsel %vm96_vm0, %v108_v9, 0.0 }
  0xe1   :  { %111 = vadd.xlane.f32.xlu1 %v110_v11 }
  0xe2   :  { %v109_v12 = vmul.f32 %v107_v10, %v107_v10 }
  0xe4   :  { %v113_v13 = vsel %vm96_vm0, %v109_v12, 0.0 }
  0xe5   :  { %114 = vadd.xlane.f32.xlu1 %v113_v13 }
 0x16e   :  { %v112_v29 = vpop.xlane.xlu1 %111 }
 0x16f   :  { %v116_v30 = vmul.f32 0.03125, %v112_v29 }
 0x171   :  { %v118_v31 = vadd.f32 1e-05, %v116_v30 }
 0x172   :  { %v115_v32 = vpop.xlane.xlu1 %114 }
 0x173   :  { %555 = vrsqrt.f32 %v118_v31  ;;  %v117_v33 = vmul.f32 0.03125, %v115_v32 }
 0x175   :  { %v119_v34 = vadd.f32 1e-05, %v117_v33 }
 0x177   :  { %557 = vrsqrt.f32 %v119_v34 }
 0x17d   :  { %v556_v35 = vpop.eup %555 }
 0x17e   :  { %v122_v37 = vmul.f32 %v556_v35, %v106_v6 }
 0x180   :  { %v130_v39 = vmul.f32 %v460_v36, %v122_v37 }
 0x181   :  { %v558_v40 = vpop.eup %557 }
 0x182   :  { %v123_v41 = vmul.f32 %v558_v40, %v107_v10  ;;  %v138_v42 = vadd.f32 %v461_v38, %v130_v39 }
 0x184   :  { %v131_v45 = vmul.f32 %v460_v36, %v123_v41  ;;  %497 = vmatprep.mubr.msk.f32.mxu0 %vm96_vm0, %v138_v42  ;;  %508 = vmatprep.mubr.msk.f32.mxu1 %vm96_vm0, %v138_v42 }
 0x186   :  { %v139_v46 = vadd.f32 %v461_v38, %v131_v45 }
 0x188   :  { %498 = vmatmul.mubr.msk.f32.vlgmr.msra.gmra.mrb[0].mxu0 %vm96_vm0, %v139_v46  ;;  %509 = vmatmul.mubr.msk.f32.vlgmr.msra.gmra.mrb[0].mxu1 %vm96_vm0, %v139_v46 }
 0x189   :  { %541 = vmatpush3.bf16.msra.mxu0 %v538_v28  ;;  %519 = vmatprep.mubr.msk.f32.mxu0 %vm96_vm0, %v138_v42 }
 0x18a   :  { %543 = vmatprep.subr.bf16.mxu0 %v542_v47 }
 0x18d   :  { %545 = vmatpush3.bf16.msra.mxu0 %v542_v47 }
 0x190   :  { %520 = vmatmul.mubr.msk.f32.vlgmr.msra.gmra.mrb[2].mxu0 %vm96_vm0, %v139_v46 }
 0x25b   :  { %v499_v50 = vpop.f32.mrb[0].mxu0  ;;  %v510_v51 = vpop.f32.mrb[0].mxu1 }
 0x25c   :  { %v229_v52 = vadd.f32 %v499_v50, %v462_v48  ;;  %v315_v53 = vadd.f32 %v510_v51, %v465_v49  ;;  %v223_v54 = vpop.f32.mrb[1].mxu0  ;;  %v309_v55 = vpop.f32.mrb[1].mxu1 }
 0x25d   :  { %v224_v56 = vadd.f32 %v462_v48, %v223_v54  ;;  %v310_v57 = vadd.f32 %v465_v49, %v309_v55 }
 0x25e   :  { %405 = vst.msk [vmem:[#allocation10 + $0x8] sm:$0xff] %vm96_vm0, %v229_v52  ;;  %407 = vst.msk [vmem:[#allocation11 + $0x8] sm:$0xff] %vm96_vm0, %v315_v53 }
 0x25f   :  { %404 = vst.msk [vmem:[#allocation10] sm:$0xff] %vm96_vm0, %v224_v56  ;;  %406 = vst.msk [vmem:[#allocation11] sm:$0xff] %vm96_vm0, %v310_v57 }
 0x260   :  { %658 = shalt.err (!%p655_p8)
}
 0x261   :  { %s659_s23 = scalar_lea.hbm %s959_s10, 256 }
 0x262   :  { %p660_p9 = scmp.ne.s32.totalorder %s959_s10, %s659_s23  ;;  %p663_p10 = scmp.lt.u32.totalorder %s659_s23, %s959_s10 }
 0x264   :  { %p665_p11 = pnand %p663_p10, %p660_p9 }
 0x266   :  { %668 = shalt.err (!%p665_p11)
}
 0x267   :  { %433 = dma.vmem_to_hbm [thread:$0]  %s428_s17, 256, %s959_s10, [#allocation12], %s725_s29, %s725_s29, %s726_s30  }
 0x268   :  { %s669_s4 = scalar_lea.vmem %s890_s20, 256  ;;  %p674_p13 = scmp.lt.s32.totalorder %s890_s20, %s890_s20 }
 0x269   :  { %p670_p12 = scmp.ne.s32.totalorder %s890_s20, %s669_s4  ;;  %p675_p0 = scmp.lt.s32.totalorder %s669_s4, %s669_s4 }
 0x26b   :  { %p676_p1 = por %p675_p0, %p674_p13 }
 0x26d   :  { %p677_p2 = pnand %p676_p1, %p670_p12 }
 0x26f   :  { %680 = shalt.err (!%p677_p2)
}
 0x270   :  { %s681_s27 = scalar_lea.hbm %s958_s9, 256 }
 0x271   :  { %p682_p3 = scmp.ne.s32.totalorder %s958_s9, %s681_s27  ;;  %p685_p4 = scmp.lt.u32.totalorder %s681_s27, %s958_s9 }
 0x273   :  { %p687_p5 = pnand %p685_p4, %p682_p3 }
 0x275   :  { %690 = shalt.err (!%p687_p5)
}
 0x276   :  { %421 = dma.vmem_to_hbm [thread:$0]  %s890_s20, 256, %s958_s9, [#allocation4], %s725_s29, %s725_s29, %s726_s30   ;;  %v521_v59 = vpop.f32.mrb[2].mxu0 }
 0x277   :  { %s731_s15 = smov [#allocation13]   ;;  %v401_v60 = vadd.f32 %v521_v59, %v468_v58  ;;  %v395_v61 = vpop.f32.mrb[3].mxu0 }
 0x278   :  { %s439_s16 = sshll.u32 %s731_s15, 4  ;;  %v396_v62 = vadd.f32 %v468_v58, %v395_v61  ;;  %s440_s16 = int_to_ptr.vmem [resolvable:$true] %s439_s16 }
 0x279   :  { %409 = vst.msk [vmem:[#allocation13 + $0x8] sm:$0xff] %vm96_vm0, %v401_v60  ;;  %s691_s17 = scalar_lea.vmem %s440_s16, 256  ;;  %p696_p7 = scmp.lt.s32.totalorder %s440_s16, %s440_s16 }
 0x27a   :  { %408 = vst.msk [vmem:[#allocation13] sm:$0xff] %vm96_vm0, %v396_v62  ;;  %p692_p6 = scmp.ne.s32.totalorder %s440_s16, %s691_s17  ;;  %p697_p8 = scmp.lt.s32.totalorder %s691_s17, %s691_s17 }
 0x27c   :  { %p698_p9 = por %p697_p8, %p696_p7 }
 0x27e   :  { %p699_p10 = pnand %p698_p9, %p692_p6 }
 0x280   :  { %702 = shalt.err (!%p699_p10)
}
 0x281   :  { %s703_s20 = scalar_lea.hbm %s960_s11, 256 }
 0x282   :  { %p704_p11 = scmp.ne.s32.totalorder %s960_s11, %s703_s20  ;;  %p707_p12 = scmp.lt.u32.totalorder %s703_s20, %s960_s11 }
 0x284   :  { %p709_p13 = pnand %p707_p12, %p704_p11 }
 0x286   :  { %712 = shalt.err (!%p709_p13)
}
 0x287   :  { %445 = dma.vmem_to_hbm [thread:$0]  %s440_s16, 256, %s960_s11, [#allocation12], %s725_s29, %s725_s29, %s726_s30  }
 0x288   :  { %719 = dma.done.wait [#allocation4], 256  }
 0x289   :  { %720 = vsyncadd [#allocation4], 4294967040 }
 0x28a   :  { %721 = dma.done.wait [#allocation12], 512  }
 0x28b   :  { %722 = vsyncadd [#allocation12], 4294966784 }
 0x28c   :  { %455 = vsyncpa [#allocation3], 1 }
 0x28d   :  { %456 = vsyncpa [#allocation6], 1 }
 0x28e   :  { %457 = vsyncpa [#allocation9], 1 }
 0x28f   :  { %458 = vsyncpa [#allocation4], 1 }
 0x290   :  { %459 = vsyncpa [#allocation12], 1 }

</bundles_post_ra>
